<compile_context>
chip_gen: v7x
topology: tpu7x:2x2x1
jax: 0.10.0
libtpu: 0.0.40
codegen_flags: <defaults>
</compile_context>

<pallas_src>
import functools

import jax
import jax.numpy as jnp
from jax.experimental import pallas as pl
from jax.experimental.pallas import tpu as pltpu

EPS = 1e-5


def _round_up(n, m):
    return (n + m - 1) // m * m


def _vmem_capacity_bytes():
    # Per-generation sizing: v7x has 64 MiB physical VMEM, v5e/v6e have 128 MiB.
    try:
        return int(pltpu.get_tpu_info().vmem_capacity_bytes)
    except Exception:
        return 64 * 1024 * 1024            # conservative (v7x) fallback


_VMEM_CAP = _vmem_capacity_bytes()
_VMEM_LIMIT = int(min(_VMEM_CAP * 3 // 4, 100 * 1024 * 1024))  # ~48MiB v7x / 96MiB v5e,v6e
_KTILE_MAX = 1024 if _VMEM_CAP >= (96 << 20) else 512          # bigger K blocks when VMEM allows
_TM_MAX = 256  # rows per M tile; a few hundred KiB per block (raiseable to 512 on v5e/v6e)


def _choose_k(K):
    """Contraction dim padded to a multiple of the K tile; returns (Kpad, ktile)."""
    kpad = _round_up(K, 128)
    if kpad <= _KTILE_MAX:
        return kpad, kpad
    return _round_up(K, _KTILE_MAX), _KTILE_MAX


def _choose_m(M):
    """Rows padded to a multiple of the M tile; returns (Mpad, tm)."""
    if M <= _TM_MAX:
        tm = _round_up(max(M, 8), 8)
        return tm, tm
    return _round_up(M, _TM_MAX), _TM_MAX


# ----------------------------------------------------------------------------
# Pass 1: tiled matmul + partial BatchNorm statistics
# ----------------------------------------------------------------------------
def _matmul_stats_kernel_nk1(a_ref, w_ref, y_ref, stats_ref):
    # Whole K resident: no accumulator scratch, epilogue straight from the dot.
    acc = jnp.dot(a_ref[...], w_ref[...], preferred_element_type=jnp.float32)
    y_ref[...] = acc.astype(y_ref.dtype)
    s = jnp.sum(acc, axis=0, keepdims=True)              # [1, Npad]
    ss = jnp.sum(acc * acc, axis=0, keepdims=True)       # [1, Npad]
    stats_ref[...] = jnp.concatenate([s, ss], axis=0).reshape(stats_ref.shape)


def _matmul_stats_kernel(a_ref, w_ref, y_ref, stats_ref, acc_ref):
    k = pl.program_id(1)

    @pl.when(k == 0)
    def _():
        acc_ref[...] = jnp.zeros_like(acc_ref)

    acc_ref[...] += jnp.dot(a_ref[...], w_ref[...],
                            preferred_element_type=jnp.float32)

    @pl.when(k == pl.num_programs(1) - 1)
    def _():
        acc = acc_ref[...]
        y_ref[...] = acc.astype(y_ref.dtype)
        s = jnp.sum(acc, axis=0, keepdims=True)
        ss = jnp.sum(acc * acc, axis=0, keepdims=True)
        stats_ref[...] = jnp.concatenate([s, ss], axis=0).reshape(stats_ref.shape)


def matmul_stats(a, w, tm):
    """a:[Mpad,Kpad] bf16, w:[Kpad,Npad] bf16 -> (y bf16 [Mpad,Npad],
    partial stats f32 [nm, 2, Npad]).  Padded rows of `a` are zero so they
    contribute 0 to both sums."""
    Mpad, Kpad = a.shape
    _, Npad = w.shape
    assert Mpad % tm == 0
    nm = Mpad // tm
    kpad2, ktile = _choose_k(Kpad)
    assert kpad2 == Kpad and Kpad % ktile == 0
    nk = Kpad // ktile

    out_shape = (jax.ShapeDtypeStruct((Mpad, Npad), jnp.bfloat16),
                 jax.ShapeDtypeStruct((nm, 2, Npad), jnp.float32))

    if nk == 1:
        grid = (nm,)
        in_specs = [pl.BlockSpec((tm, Kpad), lambda m: (m, 0)),
                    pl.BlockSpec((Kpad, Npad), lambda m: (0, 0))]
        out_specs = (pl.BlockSpec((tm, Npad), lambda m: (m, 0)),
                     pl.BlockSpec((1, 2, Npad), lambda m: (m, 0, 0)))
        kernel = _matmul_stats_kernel_nk1
        scratch = []
        dims = ("parallel",)
    else:
        grid = (nm, nk)                      # M leading (parallel), K reduction
        in_specs = [pl.BlockSpec((tm, ktile), lambda m, k: (m, k)),
                    pl.BlockSpec((ktile, Npad), lambda m, k: (k, 0))]
        out_specs = (pl.BlockSpec((tm, Npad), lambda m, k: (m, 0)),
                     pl.BlockSpec((1, 2, Npad), lambda m, k: (m, 0, 0)))
        kernel = _matmul_stats_kernel
        scratch = [pltpu.VMEM((tm, Npad), jnp.float32)]
        dims = ("parallel", "arbitrary")

    return pl.pallas_call(
        kernel,
        out_shape=out_shape,
        grid_spec=pltpu.PrefetchScalarGridSpec(
            num_scalar_prefetch=0,
            grid=grid,
            in_specs=in_specs,
            out_specs=out_specs,
            scratch_shapes=scratch,
        ),
        compiler_params=pltpu.CompilerParams(
            dimension_semantics=dims,
            vmem_limit_bytes=_VMEM_LIMIT,
        ),
    )(a, w)


def _bn_scale_shift(stats, gamma, beta, m_real):
    """Reduce partial stats -> per-channel affine (var = E[y^2] - mean^2)."""
    tot = jnp.sum(stats, axis=0)                          # [2, Npad]
    mean = tot[0] / float(m_real)
    var = jnp.maximum(tot[1] / float(m_real) - mean * mean, 0.0)   # biased var
    scale = gamma[0] * jax.lax.rsqrt(var + EPS)
    shift = beta[0] - mean * scale
    return scale[None, :], shift[None, :]                 # [1, Npad] each


def conv_bn_stats(a, layer, tm, m_real):
    y, stats = matmul_stats(a, layer["w"], tm)
    scale, shift = _bn_scale_shift(stats, layer["g"], layer["b"], m_real)
    return y, scale, shift


# ----------------------------------------------------------------------------
# Pass 2: BN affine (+ fused residual BN affine) (+ ReLU)
# ----------------------------------------------------------------------------
def _make_norm_kernel(apply_relu, has_residual):
    if has_residual:
        def kernel(y_ref, sc_ref, sh_ref, r_ref, rsc_ref, rsh_ref, o_ref):
            out = y_ref[...].astype(jnp.float32) * sc_ref[...] + sh_ref[...]
            out = out + (r_ref[...].astype(jnp.float32) * rsc_ref[...] + rsh_ref[...])
            if apply_relu:
                out = jnp.maximum(out, 0.0)
            o_ref[...] = out.astype(o_ref.dtype)
    else:
        def kernel(y_ref, sc_ref, sh_ref, o_ref):
            out = y_ref[...].astype(jnp.float32) * sc_ref[...] + sh_ref[...]
            if apply_relu:
                out = jnp.maximum(out, 0.0)
            o_ref[...] = out.astype(o_ref.dtype)
    return kernel


def bn_affine_act(y, scale, shift, tm, *, relu, out_dtype,
                  residual=None, res_scale=None, res_shift=None):
    Mpad, Npad = y.shape
    assert Mpad % tm == 0
    nm = Mpad // tm

    in_specs = [pl.BlockSpec((tm, Npad), lambda m: (m, 0)),
                pl.BlockSpec((1, Npad), lambda m: (0, 0)),
                pl.BlockSpec((1, Npad), lambda m: (0, 0))]
    args = [y, scale, shift]
    if residual is not None:
        in_specs += [pl.BlockSpec((tm, Npad), lambda m: (m, 0)),
                     pl.BlockSpec((1, Npad), lambda m: (0, 0)),
                     pl.BlockSpec((1, Npad), lambda m: (0, 0))]
        args += [residual, res_scale, res_shift]

    kernel = _make_norm_kernel(relu, residual is not None)
    return pl.pallas_call(
        kernel,
        out_shape=jax.ShapeDtypeStruct((Mpad, Npad), out_dtype),
        grid_spec=pltpu.PrefetchScalarGridSpec(
            num_scalar_prefetch=0,
            grid=(nm,),
            in_specs=in_specs,
            out_specs=pl.BlockSpec((tm, Npad), lambda m: (m, 0)),
        ),
        compiler_params=pltpu.CompilerParams(
            dimension_semantics=("parallel",),
            vmem_limit_bytes=_VMEM_LIMIT,
        ),
    )(*args)


# ----------------------------------------------------------------------------
# Plain-JAX glue: im2col + parameter packing (packing done once, outside fwd)
# ----------------------------------------------------------------------------
def _im2col(x_nhwc, ksize, stride, padding):
    # TODO(synk): fold the taps into the matmul kernel (shifted NHWC slabs via
    # the BlockSpec index_map) instead of materializing a 9x copy in HBM.
    N, H, W, C = x_nhwc.shape
    Ho = (H + 2 * padding - ksize) // stride + 1
    Wo = (W + 2 * padding - ksize) // stride + 1
    xp = jnp.pad(x_nhwc, ((0, 0), (padding, padding), (padding, padding), (0, 0)))
    taps = []
    for kh in range(ksize):
        for kw in range(ksize):
            taps.append(xp[:,
                           kh:kh + stride * (Ho - 1) + 1:stride,
                           kw:kw + stride * (Wo - 1) + 1:stride,
                           :])
    cols = jnp.stack(taps, axis=3)                        # [N, Ho, Wo, k*k, C]
    return cols.reshape(N * Ho * Wo, ksize * ksize * C), (N, Ho, Wo)


def _prep_activation(x_nhwc_bf16, ksize, stride, padding, kpad, tm=None):
    """im2col + pad to [Mpad, Kpad]; stays bf16 (MXU operand dtype)."""
    a, (N, Ho, Wo) = _im2col(x_nhwc_bf16, ksize, stride, padding)
    M, K = a.shape
    if tm is None:
        Mpad, tm = _choose_m(M)
    else:
        Mpad = _round_up(M, tm)
    a = jnp.pad(a, ((0, Mpad - M), (0, kpad - K)))
    return a, M, tm, (N, Ho, Wo)


def _pack_conv_bn(w_oihw, gamma, beta):
    """PyTorch [Cout, Cin, kh, kw] -> padded bf16 [Kpad, Npad] (+ padded BN)."""
    Cout, Cin, kh, kw = w_oihw.shape
    K = kh * kw * Cin
    Kpad, _ = _choose_k(K)
    Npad = _round_up(Cout, 128)
    # TODO(synk): on v6e/v7x tile N at 256 for the Cout>=256 ResNet stages.
    w = jnp.transpose(w_oihw, (2, 3, 1, 0)).reshape(K, Cout)
    w = jnp.pad(w, ((0, Kpad - K), (0, Npad - Cout))).astype(jnp.bfloat16)
    g = jnp.pad(gamma, (0, Npad - Cout)).reshape(1, Npad).astype(jnp.float32)
    b = jnp.pad(beta, (0, Npad - Cout)).reshape(1, Npad).astype(jnp.float32)
    return {"w": w, "g": g, "b": b}


def pack_params(params):
    packed = {
        "conv1": _pack_conv_bn(params["w1"], params["g1"], params["b1"]),
        "conv2": _pack_conv_bn(params["w2"], params["g2"], params["b2"]),
    }
    if "wsc" in params:
        packed["convsc"] = _pack_conv_bn(params["wsc"], params["gsc"],
                                         params["bsc"])
    return packed


# ----------------------------------------------------------------------------
# BasicBlock forward
# ----------------------------------------------------------------------------
def basic_block_forward(x_nchw, packed, *, stride, planes):
    # Boundary transposes only to match the PyTorch NCHW interface; the block
    # itself runs NHWC / matrix layout end-to-end in bf16.
    x = jnp.transpose(x_nchw, (0, 2, 3, 1)).astype(jnp.bfloat16)  # NCHW->NHWC
    N, H, W, Cin = x.shape
    P = planes
    p1, p2 = packed["conv1"], packed["conv2"]
    Npad = p2["w"].shape[1]

    # conv1 (3x3, stride, pad 1): matmul+stats, then normalize+ReLU -> bf16.
    a1, M1, tm1, (_, Ho, Wo) = _prep_activation(x, 3, stride, 1, p1["w"].shape[0])
    y1, sc1, sh1 = conv_bn_stats(a1, p1, tm1, M1)
    h1 = bn_affine_act(y1, sc1, sh1, tm1, relu=True, out_dtype=jnp.bfloat16)
    h1 = h1[:M1, :P].reshape(N, Ho, Wo, P)

    # conv2 im2col (3x3, stride 1, pad 1).
    a2, M2, tm2, _ = _prep_activation(h1, 3, 1, 1, p2["w"].shape[0])
    Mpad2 = a2.shape[0]

    # Shortcut: its BN affine is fused into conv2's normalize kernel, so here
    # we only need the pre-BN shortcut tensor + its scale/shift.
    if "convsc" in packed:
        psc = packed["convsc"]
        asc, Msc, _, _ = _prep_activation(x, 1, stride, 0, psc["w"].shape[0],
                                          tm=tm2)
        assert asc.shape[0] == Mpad2 and Msc == M2
        r, rsc, rsh = conv_bn_stats(asc, psc, tm2, Msc)           # bf16 residual
    else:
        # Identity shortcut: residual is x itself (bf16), identity affine.
        # TODO(synk): fold this channel pad into the residual BlockSpec.
        r = jnp.pad(x.reshape(M2, Cin), ((0, Mpad2 - M2), (0, Npad - Cin)))
        rsc = jnp.ones((1, Npad), jnp.float32)
        rsh = jnp.zeros((1, Npad), jnp.float32)

    # conv2 + bn2 + residual add + ReLU (single normalize kernel).
    y2, sc2, sh2 = conv_bn_stats(a2, p2, tm2, M2)
    out = bn_affine_act(y2, sc2, sh2, tm2, relu=True, out_dtype=jnp.float32,
                        residual=r, res_scale=rsc, res_shift=rsh)
    out = out[:M2, :P].reshape(N, Ho, Wo, P)
    return jnp.transpose(out, (0, 3, 1, 2))                       # NHWC->NCHW


# ----------------------------------------------------------------------------
# Pure-JAX f32 reference (faithful to the PyTorch module, training-mode BN)
# ----------------------------------------------------------------------------
def _ref_conv(x_nhwc, w_oihw, stride, padding):
    w_hwio = jnp.transpose(w_oihw, (2, 3, 1, 0))
    return jax.lax.conv_general_dilated(
        x_nhwc, w_hwio, window_strides=(stride, stride),
        padding=[(padding, padding), (padding, padding)],
        dimension_numbers=("NHWC", "HWIO", "NHWC"))


def _ref_bn(y_nhwc, g, b):
    mean = jnp.mean(y_nhwc, axis=(0, 1, 2), keepdims=True)
    var = jnp.mean(jnp.square(y_nhwc - mean), axis=(0, 1, 2), keepdims=True)
    return (y_nhwc - mean) * jax.lax.rsqrt(var + EPS) * g + b


def basic_block_reference(x_nchw, params, *, stride):
    x = jnp.transpose(x_nchw, (0, 2, 3, 1)).astype(jnp.float32)
    Cin = x.shape[-1]
    P = params["w1"].shape[0]
    o = jax.nn.relu(_ref_bn(_ref_conv(x, params["w1"], stride, 1),
                            params["g1"], params["b1"]))
    o = _ref_bn(_ref_conv(o, params["w2"], 1, 1), params["g2"], params["b2"])
    if stride != 1 or Cin != P:
        sc = _ref_bn(_ref_conv(x, params["wsc"], stride, 0),
                     params["gsc"], params["bsc"])
    else:
        sc = x
    o = jax.nn.relu(o + sc)
    return jnp.transpose(o, (0, 3, 1, 2))


# ----------------------------------------------------------------------------
# Main
# ----------------------------------------------------------------------------
def init_params(key, in_planes, planes, stride):
    k1, k2, k3 = jax.random.split(key, 3)
    params = {
        "w1": 0.1 * jax.random.normal(k1, (planes, in_planes, 3, 3), jnp.float32),
        "g1": jnp.ones((planes,), jnp.float32),
        "b1": jnp.zeros((planes,), jnp.float32),
        "w2": 0.1 * jax.random.normal(k2, (planes, planes, 3, 3), jnp.float32),
        "g2": jnp.ones((planes,), jnp.float32),
        "b2": jnp.zeros((planes,), jnp.float32),
    }
    if stride != 1 or in_planes != planes:
        params["wsc"] = 0.1 * jax.random.normal(
            k3, (planes, in_planes, 1, 1), jnp.float32)
        params["gsc"] = jnp.ones((planes,), jnp.float32)
        params["bsc"] = jnp.zeros((planes,), jnp.float32)
    return params


def _run_and_check(key_x, key_p, in_planes, planes, stride):
    x = jax.random.normal(key_x, (2, in_planes, 16, 16), jnp.float32)
    params = init_params(key_p, in_planes, planes, stride)
    packed = pack_params(params)                      # one-time weight layout
    fwd = jax.jit(functools.partial(basic_block_forward,
                                    stride=stride, planes=planes))
    out = jax.block_until_ready(fwd(x, packed))
    ref = jax.block_until_ready(
        basic_block_reference(x, params, stride=stride))
    assert out.shape == (2, planes, 16 // stride, 16 // stride), out.shape
    err = float(jnp.max(jnp.abs(out - ref)))
    # bf16 MXU operands and bf16 intermediates (f32 accumulation / stats /
    # epilogue math) -> slightly looser tolerance than pure f32.
    assert jnp.allclose(out, ref, rtol=3e-2, atol=3e-2), err
    return err


if __name__ == "__main__":
    key = jax.random.PRNGKey(0)
    k1, k2, k3, k4 = jax.random.split(key, 4)

    # Config 1: projection (1x1 conv) shortcut — stride 2, channel change.
    _run_and_check(k1, k2, in_planes=4, planes=8, stride=2)
    # Config 2: identity shortcut — stride 1, same channels (M=512 -> 2 M-tiles,
    # exercises the partial-stats reduction and the parallel M grid axis).
    _run_and_check(k3, k4, in_planes=8, planes=8, stride=1)

    print("KERNEL_OK")
</pallas_src>

<mosaic_0001>
module attributes {stable_mosaic.version = 11 : i64} {
  func.func @_matmul_stats_kernel_nk1(%arg0: i32, %arg1: memref<128x128xbf16, #tpu.memory_space<vmem>>, %arg2: memref<128x128xbf16, #tpu.memory_space<vmem>>, %arg3: memref<128x128xbf16, #tpu.memory_space<vmem>>, %arg4: memref<1x2x128xf32, #tpu.memory_space<vmem>>) attributes {dimension_semantics = [#tpu.dimension_semantics<parallel>], iteration_bounds = array<i64: 1>, scalar_prefetch = 0 : i64, scratch_operands = 0 : i64, tpu.core_type = #tpu.core_type<tc>, window_params = [{transform_indices = @transform_0, window_bounds = array<i64: 128, 128>}, {pipeline_mode = #tpu.pipeline_mode<synchronous>, transform_indices = @transform_1, window_bounds = array<i64: 128, 128>}, {transform_indices = @transform_2, window_bounds = array<i64: 128, 128>}, {transform_indices = @transform_3, window_bounds = array<i64: 1, 2, 128>}]} {
    %c0 = arith.constant 0 : index
    %c0_0 = arith.constant 0 : index
    %0 = vector.load %arg1[%c0, %c0_0] : memref<128x128xbf16, #tpu.memory_space<vmem>>, vector<128x128xbf16>
    %c0_1 = arith.constant 0 : index
    %c0_2 = arith.constant 0 : index
    %1 = vector.load %arg2[%c0_1, %c0_2] : memref<128x128xbf16, #tpu.memory_space<vmem>>, vector<128x128xbf16>
    %cst = arith.constant dense<0.000000e+00> : vector<128x128xf32>
    %2 = tpu.matmul %0, %1, %cst {dimension_numbers = #tpu.dot_dimension_numbers<[1], [0], [0], [1], [0, 0, 1, 1], [], []>} : vector<128x128xbf16>, vector<128x128xbf16>, vector<128x128xf32> -> vector<128x128xf32>
    %3 = arith.truncf %2 : vector<128x128xf32> to vector<128x128xbf16>
    %c0_3 = arith.constant 0 : index
    %c0_4 = arith.constant 0 : index
    %4 = vector.load %arg3[%c0_3, %c0_4] : memref<128x128xbf16, #tpu.memory_space<vmem>>, vector<128x128xbf16>
    tpu.vector_store %arg3[%c0_3, %c0_4], %3 {strides = array<i32>} : memref<128x128xbf16, #tpu.memory_space<vmem>>, vector<128x128xbf16>,
    %cst_5 = arith.constant dense<0.000000e+00> : vector<128xf32>
    %5 = vector.multi_reduction <add>, %2, %cst_5 [0] : vector<128x128xf32> to vector<128xf32>
    %6 = vector.shape_cast %5 : vector<128xf32> to vector<1x128xf32>
    %7 = arith.mulf %2, %2 : vector<128x128xf32>
    %cst_6 = arith.constant dense<0.000000e+00> : vector<128xf32>
    %8 = vector.multi_reduction <add>, %7, %cst_6 [0] : vector<128x128xf32> to vector<128xf32>
    %9 = vector.shape_cast %8 : vector<128xf32> to vector<1x128xf32>
    %10 = tpu.concatenate %6, %9 in 0 : vector<1x128xf32>, vector<1x128xf32> -> vector<2x128xf32>
    %11 = vector.shape_cast %10 : vector<2x128xf32> to vector<1x2x128xf32>
    %c0_7 = arith.constant 0 : index
    %c0_8 = arith.constant 0 : index
    %c0_9 = arith.constant 0 : index
    %12 = vector.load %arg4[%c0_7, %c0_8, %c0_9] : memref<1x2x128xf32, #tpu.memory_space<vmem>>, vector<1x2x128xf32>
    tpu.vector_store %arg4[%c0_7, %c0_8, %c0_9], %11 {strides = array<i32>} : memref<1x2x128xf32, #tpu.memory_space<vmem>>, vector<1x2x128xf32>,
    return
  }
  func.func @transform_0(%arg0: i32) -> (i32, i32) {
    %c0_i32 = arith.constant 0 : i32
    %c0_i32_0 = arith.constant 0 : i32
    return %arg0, %c0_i32 : i32, i32
  }
  func.func @transform_1(%arg0: i32) -> (i32, i32) {
    %c0_i32 = arith.constant 0 : i32
    %c0_i32_0 = arith.constant 0 : i32
    %c0_i32_1 = arith.constant 0 : i32
    return %c0_i32, %c0_i32_0 : i32, i32
  }
  func.func @transform_2(%arg0: i32) -> (i32, i32) {
    %c0_i32 = arith.constant 0 : i32
    %c0_i32_0 = arith.constant 0 : i32
    return %arg0, %c0_i32 : i32, i32
  }
  func.func @transform_3(%arg0: i32) -> (i32, i32, i32) {
    %c0_i32 = arith.constant 0 : i32
    %c0_i32_0 = arith.constant 0 : i32
    %c0_i32_1 = arith.constant 0 : i32
    return %arg0, %c0_i32, %c0_i32_0 : i32, i32, i32
  }
}

module attributes {stable_mosaic.version = 11 : i64} {
  func.func @kernel(%arg0: i32, %arg1: memref<128x128xbf16, #tpu.memory_space<vmem>>, %arg2: memref<1x128xf32, #tpu.memory_space<vmem>>, %arg3: memref<1x128xf32, #tpu.memory_space<vmem>>, %arg4: memref<128x128xbf16, #tpu.memory_space<vmem>>) attributes {dimension_semantics = [#tpu.dimension_semantics<parallel>], iteration_bounds = array<i64: 1>, scalar_prefetch = 0 : i64, scratch_operands = 0 : i64, tpu.core_type = #tpu.core_type<tc>, window_params = [{transform_indices = @transform_0, window_bounds = array<i64: 128, 128>}, {pipeline_mode = #tpu.pipeline_mode<synchronous>, transform_indices = @transform_1, window_bounds = array<i64: 1, 128>}, {pipeline_mode = #tpu.pipeline_mode<synchronous>, transform_indices = @transform_2, window_bounds = array<i64: 1, 128>}, {transform_indices = @transform_3, window_bounds = array<i64: 128, 128>}]} {
    %c0 = arith.constant 0 : index
    %c0_0 = arith.constant 0 : index
    %0 = vector.load %arg1[%c0, %c0_0] : memref<128x128xbf16, #tpu.memory_space<vmem>>, vector<128x128xbf16>
    %1 = arith.extf %0 : vector<128x128xbf16> to vector<128x128xf32>
    %c0_1 = arith.constant 0 : index
    %c0_2 = arith.constant 0 : index
    %2 = vector.load %arg2[%c0_1, %c0_2] : memref<1x128xf32, #tpu.memory_space<vmem>>, vector<1x128xf32>
    %3 = vector.broadcast %2 : vector<1x128xf32> to vector<128x128xf32>
    %4 = arith.mulf %1, %3 : vector<128x128xf32>
    %c0_3 = arith.constant 0 : index
    %c0_4 = arith.constant 0 : index
    %5 = vector.load %arg3[%c0_3, %c0_4] : memref<1x128xf32, #tpu.memory_space<vmem>>, vector<1x128xf32>
    %6 = vector.broadcast %5 : vector<1x128xf32> to vector<128x128xf32>
    %7 = arith.addf %4, %6 : vector<128x128xf32>
    %cst = arith.constant 0.000000e+00 : f32
    %8 = vector.broadcast %cst : f32 to vector<128x128xf32>
    %9 = arith.maximumf %7, %8 : vector<128x128xf32>
    %10 = arith.truncf %9 : vector<128x128xf32> to vector<128x128xbf16>
    %c0_5 = arith.constant 0 : index
    %c0_6 = arith.constant 0 : index
    %11 = vector.load %arg4[%c0_5, %c0_6] : memref<128x128xbf16, #tpu.memory_space<vmem>>, vector<128x128xbf16>
    tpu.vector_store %arg4[%c0_5, %c0_6], %10 {strides = array<i32>} : memref<128x128xbf16, #tpu.memory_space<vmem>>, vector<128x128xbf16>,
    return
  }
  func.func @transform_0(%arg0: i32) -> (i32, i32) {
    %c0_i32 = arith.constant 0 : i32
    %c0_i32_0 = arith.constant 0 : i32
    return %arg0, %c0_i32 : i32, i32
  }
  func.func @transform_1(%arg0: i32) -> (i32, i32) {
    %c0_i32 = arith.constant 0 : i32
    %c0_i32_0 = arith.constant 0 : i32
    %c0_i32_1 = arith.constant 0 : i32
    return %c0_i32, %c0_i32_0 : i32, i32
  }
  func.func @transform_2(%arg0: i32) -> (i32, i32) {
    %c0_i32 = arith.constant 0 : i32
    %c0_i32_0 = arith.constant 0 : i32
    %c0_i32_1 = arith.constant 0 : i32
    return %c0_i32, %c0_i32_0 : i32, i32
  }
  func.func @transform_3(%arg0: i32) -> (i32, i32) {
    %c0_i32 = arith.constant 0 : i32
    %c0_i32_0 = arith.constant 0 : i32
    return %arg0, %c0_i32 : i32, i32
  }
}

module attributes {stable_mosaic.version = 11 : i64} {
  func.func @kernel(%arg0: i32, %arg1: memref<128x128xbf16, #tpu.memory_space<vmem>>, %arg2: memref<1x128xf32, #tpu.memory_space<vmem>>, %arg3: memref<1x128xf32, #tpu.memory_space<vmem>>, %arg4: memref<128x128xbf16, #tpu.memory_space<vmem>>, %arg5: memref<1x128xf32, #tpu.memory_space<vmem>>, %arg6: memref<1x128xf32, #tpu.memory_space<vmem>>, %arg7: memref<128x128xf32, #tpu.memory_space<vmem>>) attributes {dimension_semantics = [#tpu.dimension_semantics<parallel>], iteration_bounds = array<i64: 1>, scalar_prefetch = 0 : i64, scratch_operands = 0 : i64, tpu.core_type = #tpu.core_type<tc>, window_params = [{transform_indices = @transform_0, window_bounds = array<i64: 128, 128>}, {pipeline_mode = #tpu.pipeline_mode<synchronous>, transform_indices = @transform_1, window_bounds = array<i64: 1, 128>}, {pipeline_mode = #tpu.pipeline_mode<synchronous>, transform_indices = @transform_2, window_bounds = array<i64: 1, 128>}, {transform_indices = @transform_3, window_bounds = array<i64: 128, 128>}, {pipeline_mode = #tpu.pipeline_mode<synchronous>, transform_indices = @transform_4, window_bounds = array<i64: 1, 128>}, {pipeline_mode = #tpu.pipeline_mode<synchronous>, transform_indices = @transform_5, window_bounds = array<i64: 1, 128>}, {transform_indices = @transform_6, window_bounds = array<i64: 128, 128>}]} {
    %c0 = arith.constant 0 : index
    %c0_0 = arith.constant 0 : index
    %0 = vector.load %arg1[%c0, %c0_0] : memref<128x128xbf16, #tpu.memory_space<vmem>>, vector<128x128xbf16>
    %1 = arith.extf %0 : vector<128x128xbf16> to vector<128x128xf32>
    %c0_1 = arith.constant 0 : index
    %c0_2 = arith.constant 0 : index
    %2 = vector.load %arg2[%c0_1, %c0_2] : memref<1x128xf32, #tpu.memory_space<vmem>>, vector<1x128xf32>
    %3 = vector.broadcast %2 : vector<1x128xf32> to vector<128x128xf32>
    %4 = arith.mulf %1, %3 : vector<128x128xf32>
    %c0_3 = arith.constant 0 : index
    %c0_4 = arith.constant 0 : index
    %5 = vector.load %arg3[%c0_3, %c0_4] : memref<1x128xf32, #tpu.memory_space<vmem>>, vector<1x128xf32>
    %6 = vector.broadcast %5 : vector<1x128xf32> to vector<128x128xf32>
    %7 = arith.addf %4, %6 : vector<128x128xf32>
    %c0_5 = arith.constant 0 : index
    %c0_6 = arith.constant 0 : index
    %8 = vector.load %arg4[%c0_5, %c0_6] : memref<128x128xbf16, #tpu.memory_space<vmem>>, vector<128x128xbf16>
    %9 = arith.extf %8 : vector<128x128xbf16> to vector<128x128xf32>
    %c0_7 = arith.constant 0 : index
    %c0_8 = arith.constant 0 : index
    %10 = vector.load %arg5[%c0_7, %c0_8] : memref<1x128xf32, #tpu.memory_space<vmem>>, vector<1x128xf32>
    %11 = vector.broadcast %10 : vector<1x128xf32> to vector<128x128xf32>
    %12 = arith.mulf %9, %11 : vector<128x128xf32>
    %c0_9 = arith.constant 0 : index
    %c0_10 = arith.constant 0 : index
    %13 = vector.load %arg6[%c0_9, %c0_10] : memref<1x128xf32, #tpu.memory_space<vmem>>, vector<1x128xf32>
    %14 = vector.broadcast %13 : vector<1x128xf32> to vector<128x128xf32>
    %15 = arith.addf %12, %14 : vector<128x128xf32>
    %16 = arith.addf %7, %15 : vector<128x128xf32>
    %cst = arith.constant 0.000000e+00 : f32
    %17 = vector.broadcast %cst : f32 to vector<128x128xf32>
    %18 = arith.maximumf %16, %17 : vector<128x128xf32>
    %c0_11 = arith.constant 0 : index
    %c0_12 = arith.constant 0 : index
    %19 = vector.load %arg7[%c0_11, %c0_12] : memref<128x128xf32, #tpu.memory_space<vmem>>, vector<128x128xf32>
    tpu.vector_store %arg7[%c0_11, %c0_12], %18 {strides = array<i32>} : memref<128x128xf32, #tpu.memory_space<vmem>>, vector<128x128xf32>,
    return
  }
  func.func @transform_0(%arg0: i32) -> (i32, i32) {
    %c0_i32 = arith.constant 0 : i32
    %c0_i32_0 = arith.constant 0 : i32
    return %arg0, %c0_i32 : i32, i32
  }
  func.func @transform_1(%arg0: i32) -> (i32, i32) {
    %c0_i32 = arith.constant 0 : i32
    %c0_i32_0 = arith.constant 0 : i32
    %c0_i32_1 = arith.constant 0 : i32
    return %c0_i32, %c0_i32_0 : i32, i32
  }
  func.func @transform_2(%arg0: i32) -> (i32, i32) {
    %c0_i32 = arith.constant 0 : i32
    %c0_i32_0 = arith.constant 0 : i32
    %c0_i32_1 = arith.constant 0 : i32
    return %c0_i32, %c0_i32_0 : i32, i32
  }
  func.func @transform_3(%arg0: i32) -> (i32, i32) {
    %c0_i32 = arith.constant 0 : i32
    %c0_i32_0 = arith.constant 0 : i32
    return %arg0, %c0_i32 : i32, i32
  }
  func.func @transform_4(%arg0: i32) -> (i32, i32) {
    %c0_i32 = arith.constant 0 : i32
    %c0_i32_0 = arith.constant 0 : i32
    %c0_i32_1 = arith.constant 0 : i32
    return %c0_i32, %c0_i32_0 : i32, i32
  }
  func.func @transform_5(%arg0: i32) -> (i32, i32) {
    %c0_i32 = arith.constant 0 : i32
    %c0_i32_0 = arith.constant 0 : i32
    %c0_i32_1 = arith.constant 0 : i32
    return %c0_i32, %c0_i32_0 : i32, i32
  }
  func.func @transform_6(%arg0: i32) -> (i32, i32) {
    %c0_i32 = arith.constant 0 : i32
    %c0_i32_0 = arith.constant 0 : i32
    return %arg0, %c0_i32 : i32, i32
  }
}

</mosaic_0001>

<bundles_post_ra>
// kernel: basic_block_forward.6
= control target key start
LH: loop header
LB: loop body
LE: loop exit
PB: predicated region body
PF: predicated region fallthrough
CT: control target
= control target key end

     0   :  { %s422_s0 = inlined_call_operand.vmem [shape: bf16[128,128], index: 0, kind: input, shape index: {}]   ;;  %s423_s1 = inlined_call_operand.vmem [shape: f32[1,128], index: 1, kind: input, shape index: {}]   ;;  %s424_s2 = inlined_call_operand.vmem [shape: f32[1,128], index: 2, kind: input, shape index: {}]   ;;  %s425_s3 = inlined_call_operand.vmem [shape: bf16[128,128], index: 3, kind: output, shape index: {}]  }
   0x1   :  { %v227_v0 = vld [vmem:[%s422_s0] sm:$0xff]   ;;  %v298_v4 = vld [vmem:[%s422_s0 + $0x8] sm:$0xff]   ;;  %v299_v5 = vld [vmem:[%s422_s0 + $0x10] sm:$0xff]  }
   0x2   :  { %v338_v1 = vld [vmem:[%s423_s1] ss:$0 sm:$0xff]  ;;  %v228_v2 = vunpack.c.l.bf16 %v227_v0  ;;  %v229_v3 = vunpack.c.h.bf16 %v227_v0  ;;  %v300_v6 = vld [vmem:[%s422_s0 + $0x18] sm:$0xff]   ;;  %v232_v8 = vunpack.c.l.bf16 %v298_v4  ;;  %v233_v9 = vunpack.c.h.bf16 %v298_v4  ;;  %v302_v33 = vld [vmem:[%s422_s0 + $0x28] sm:$0xff]  }
   0x3   :  { %v352_v7 = vld [vmem:[%s424_s2] ss:$0 sm:$0xff]  ;;  %v236_v10 = vunpack.c.l.bf16 %v299_v5  ;;  %v237_v11 = vunpack.c.h.bf16 %v299_v5  ;;  %v240_v14 = vunpack.c.l.bf16 %v300_v6  ;;  %v241_v15 = vunpack.c.h.bf16 %v300_v6  ;;  %v303_v38 = vld [vmem:[%s422_s0 + $0x30] sm:$0xff]   ;;  %v304_v43 = vld [vmem:[%s422_s0 + $0x38] sm:$0xff]  }
   0x4   :  { %v53_v12 = vmul.f32 %v228_v2, %v338_v1  ;;  %v54_v13 = vmul.f32 %v229_v3, %v338_v1  ;;  %v55_v16 = vmul.f32 %v232_v8, %v338_v1  ;;  %v56_v17 = vmul.f32 %v233_v9, %v338_v1  ;;  %v301_v28 = vld [vmem:[%s422_s0 + $0x20] sm:$0xff]  }
   0x5   :  { %v57_v18 = vmul.f32 %v236_v10, %v338_v1  ;;  %v58_v19 = vmul.f32 %v237_v11, %v338_v1  ;;  %v59_v22 = vmul.f32 %v240_v14, %v338_v1  ;;  %v60_v23 = vmul.f32 %v241_v15, %v338_v1 }
   0x6   :  { %v76_v20 = vadd.f32 %v352_v7, %v53_v12  ;;  %v77_v21 = vadd.f32 %v352_v7, %v54_v13  ;;  %v78_v24 = vadd.f32 %v352_v7, %v55_v16  ;;  %v79_v25 = vadd.f32 %v352_v7, %v56_v17 }
   0x7   :  { %v80_v26 = vadd.f32 %v352_v7, %v57_v18  ;;  %v81_v27 = vadd.f32 %v352_v7, %v58_v19  ;;  %v82_v31 = vadd.f32 %v352_v7, %v59_v22  ;;  %v83_v32 = vadd.f32 %v352_v7, %v60_v23 }
   0x8   :  { %v92_v29 = vmax.f32 %v76_v20, 0.0  ;;  %v93_v30 = vmax.f32 %v77_v21, 0.0  ;;  %v94_v34 = vmax.f32 %v78_v24, 0.0  ;;  %v95_v35 = vmax.f32 %v79_v25, 0.0 }
   0x9   :  { %v96_v36 = vmax.f32 %v80_v26, 0.0  ;;  %v97_v37 = vmax.f32 %v81_v27, 0.0  ;;  %v98_v40 = vmax.f32 %v82_v31, 0.0  ;;  %v99_v41 = vmax.f32 %v83_v32, 0.0 }
   0xa   :  { %v261_v39 = vpack.c.bf16 %v93_v30, %v92_v29  ;;  %v244_v42 = vunpack.c.l.bf16 %v301_v28  ;;  %v266_v44 = vpack.c.bf16 %v95_v35, %v94_v34  ;;  %v245_v46 = vunpack.c.h.bf16 %v301_v28 }
   0xb   :  { %v271_v45 = vpack.c.bf16 %v97_v37, %v96_v36  ;;  %v248_v47 = vunpack.c.l.bf16 %v302_v33  ;;  %v276_v48 = vpack.c.bf16 %v99_v41, %v98_v40  ;;  %v249_v50 = vunpack.c.h.bf16 %v302_v33 }
   0xc   :  { %262 = vst [vmem:[%s425_s3] sm:$0xff] %v261_v39   ;;  %v61_v49 = vmul.f32 %v244_v42, %v338_v1  ;;  %v252_v51 = vunpack.c.l.bf16 %v303_v38  ;;  %305 = vst [vmem:[%s425_s3 + $0x8] sm:$0xff] %v266_v44   ;;  %v62_v52 = vmul.f32 %v245_v46, %v338_v1  ;;  %v253_v54 = vunpack.c.h.bf16 %v303_v38 }
   0xd   :  { %306 = vst [vmem:[%s425_s3 + $0x10] sm:$0xff] %v271_v45   ;;  %v63_v53 = vmul.f32 %v248_v47, %v338_v1  ;;  %v256_v55 = vunpack.c.l.bf16 %v304_v43  ;;  %307 = vst [vmem:[%s425_s3 + $0x18] sm:$0xff] %v276_v48   ;;  %v64_v57 = vmul.f32 %v249_v50, %v338_v1  ;;  %v257_v59 = vunpack.c.h.bf16 %v304_v43 }
   0xe   :  { %v84_v56 = vadd.f32 %v352_v7, %v61_v49  ;;  %v65_v58 = vmul.f32 %v252_v51, %v338_v1  ;;  %v85_v60 = vadd.f32 %v352_v7, %v62_v52  ;;  %v66_v62 = vmul.f32 %v253_v54, %v338_v1 }
   0xf   :  { %v86_v61 = vadd.f32 %v352_v7, %v63_v53  ;;  %v67_v63 = vmul.f32 %v256_v55, %v338_v1  ;;  %v87_v2 = vadd.f32 %v352_v7, %v64_v57  ;;  %v68_v4 = vmul.f32 %v257_v59, %v338_v1 }
  0x10   :  { %v100_v0 = vmax.f32 %v84_v56, 0.0  ;;  %v88_v3 = vadd.f32 %v352_v7, %v65_v58  ;;  %v101_v5 = vmax.f32 %v85_v60, 0.0  ;;  %v89_v8 = vadd.f32 %v352_v7, %v66_v62 }
  0x11   :  { %v102_v6 = vmax.f32 %v86_v61, 0.0  ;;  %v90_v9 = vadd.f32 %v352_v7, %v67_v63  ;;  %v103_v10 = vmax.f32 %v87_v2, 0.0  ;;  %v91_v12 = vadd.f32 %v352_v7, %v68_v4 }
  0x12   :  { %v104_v11 = vmax.f32 %v88_v3, 0.0  ;;  %v281_v13 = vpack.c.bf16 %v101_v5, %v100_v0  ;;  %v105_v14 = vmax.f32 %v89_v8, 0.0 }
  0x13   :  { %v106_v15 = vmax.f32 %v90_v9, 0.0  ;;  %v286_v16 = vpack.c.bf16 %v103_v10, %v102_v6  ;;  %v107_v17 = vmax.f32 %v91_v12, 0.0 }
  0x14   :  { %308 = vst [vmem:[%s425_s3 + $0x20] sm:$0xff] %v281_v13   ;;  %v291_v1 = vpack.c.bf16 %v105_v14, %v104_v11 }
  0x15   :  { %309 = vst [vmem:[%s425_s3 + $0x28] sm:$0xff] %v286_v16   ;;  %v296_v18 = vpack.c.bf16 %v107_v17, %v106_v15 }
  0x16   :  { %310 = vst [vmem:[%s425_s3 + $0x30] sm:$0xff] %v291_v1  }
  0x17   :  { %311 = vst [vmem:[%s425_s3 + $0x38] sm:$0xff] %v296_v18  }

// kernel: basic_block_forward.5
= control target key start
LH: loop header
LB: loop body
LE: loop exit
PB: predicated region body
PF: predicated region fallthrough
CT: control target
= control target key end

     0   :  { %vm377_vm0 = vcmask 1040384   ;;  %s658_s1 = inlined_call_operand.vmem [shape: bf16[128,128], index: 1, kind: input, shape index: {}]   ;;  %s659_s0 = inlined_call_operand.vmem [shape: bf16[128,128], index: 0, kind: input, shape index: {}]   ;;  %s660_s2 = inlined_call_operand.vmem [shape: bf16[128,128], index: 2, kind: output, shape index: {0}]   ;;  %s661_s3 = inlined_call_operand.vmem [shape: f32[1,2,128], index: 3, kind: output, shape index: {1}]  }
   0x1   :  { %v547_v0 = vld [vmem:[%s658_s1] sm:$0xff]   ;;  %v548_v1 = vld [vmem:[%s658_s1 + $0x8] sm:$0xff]   ;;  %v549_v2 = vld [vmem:[%s658_s1 + $0x10] sm:$0xff]  }
   0x2   :  { %499 = vmatprep.subr.bf16.mxu0 %v547_v0  ;;  %531 = vmatprep.subr.bf16.mxu1 %v547_v0  ;;  %v550_v3 = vld [vmem:[%s658_s1 + $0x18] sm:$0xff]   ;;  %v555_v4 = vld [vmem:[%s659_s0] sm:$0xff]   ;;  %v552_v7 = vld [vmem:[%s658_s1 + $0x28] sm:$0xff]  }
   0x3   :  { %500 = vmatpush3.bf16.msra.mxu0 %v547_v0  ;;  %539 = vmatpush3.bf16.msra.mxu1 %v547_v0  ;;  %v551_v5 = vld [vmem:[%s658_s1 + $0x20] sm:$0xff]   ;;  %v553_v8 = vld [vmem:[%s658_s1 + $0x30] sm:$0xff]   ;;  %v554_v9 = vld [vmem:[%s658_s1 + $0x38] sm:$0xff]  }
   0x4   :  { %501 = vmatprep.subr.bf16.mxu0 %v548_v1  ;;  %532 = vmatprep.subr.bf16.mxu1 %v548_v1  ;;  %v559_v6 = vld [vmem:[%s659_s0 + $0x20] sm:$0xff]   ;;  %v556_v10 = vld [vmem:[%s659_s0 + $0x8] sm:$0xff]   ;;  %v557_v12 = vld [vmem:[%s659_s0 + $0x10] sm:$0xff]  }
   0x5   :  { %515 = vmatprep.mubr.bf16.mxu0 %v555_v4  ;;  %523 = vmatprep.mubr.bf16.mxu1 %v559_v6  ;;  %v560_v11 = vld [vmem:[%s659_s0 + $0x28] sm:$0xff]   ;;  %v561_v13 = vld [vmem:[%s659_s0 + $0x30] sm:$0xff]   ;;  %v558_v14 = vld [vmem:[%s659_s0 + $0x18] sm:$0xff]  }
   0x6   :  { %v562_v15 = vld [vmem:[%s659_s0 + $0x38] sm:$0xff]  }
   0x7   :  { %502 = vmatpush3.bf16.msra.mxu0 %v548_v1  ;;  %540 = vmatpush3.bf16.msra.mxu1 %v548_v1 }
   0x8   :  { %503 = vmatprep.subr.bf16.mxu0 %v549_v2  ;;  %533 = vmatprep.subr.bf16.mxu1 %v549_v2 }
   0xb   :  { %504 = vmatpush3.bf16.msra.mxu0 %v549_v2  ;;  %541 = vmatpush3.bf16.msra.mxu1 %v549_v2 }
   0xc   :  { %505 = vmatprep.subr.bf16.mxu0 %v550_v3  ;;  %534 = vmatprep.subr.bf16.mxu1 %v550_v3 }
   0xf   :  { %506 = vmatpush3.bf16.msra.mxu0 %v550_v3  ;;  %542 = vmatpush3.bf16.msra.mxu1 %v550_v3 }
  0x10   :  { %507 = vmatprep.subr.bf16.mxu0 %v551_v5  ;;  %535 = vmatprep.subr.bf16.mxu1 %v551_v5 }
  0x13   :  { %508 = vmatpush3.bf16.msra.mxu0 %v551_v5  ;;  %543 = vmatpush3.bf16.msra.mxu1 %v551_v5 }
  0x14   :  { %509 = vmatprep.subr.bf16.mxu0 %v552_v7  ;;  %536 = vmatprep.subr.bf16.mxu1 %v552_v7 }
  0x17   :  { %510 = vmatpush3.bf16.msra.mxu0 %v552_v7  ;;  %544 = vmatpush3.bf16.msra.mxu1 %v552_v7 }
  0x18   :  { %511 = vmatprep.subr.bf16.mxu0 %v553_v8  ;;  %537 = vmatprep.subr.bf16.mxu1 %v553_v8 }
  0x1b   :  { %512 = vmatpush3.bf16.msra.mxu0 %v553_v8  ;;  %545 = vmatpush3.bf16.msra.mxu1 %v553_v8 }
  0x1c   :  { %513 = vmatprep.subr.bf16.mxu0 %v554_v9  ;;  %538 = vmatprep.subr.bf16.mxu1 %v554_v9 }
  0x1f   :  { %514 = vmatpush3.bf16.msra.mxu0 %v554_v9  ;;  %546 = vmatpush3.bf16.msra.mxu1 %v554_v9 }
  0x22   :  { %516 = vmatmul.mubr.bf16.vlgmr.msra.gmra.mrb[0].mxu0 %v556_v10  ;;  %524 = vmatmul.mubr.bf16.vlgmr.msra.gmra.mrb[0].mxu1 %v560_v11 }
  0x23   :  { %519 = vmatprep.mubr.bf16.mxu0 %v557_v12  ;;  %527 = vmatprep.mubr.bf16.mxu1 %v561_v13 }
  0x2a   :  { %520 = vmatmul.mubr.bf16.gmra.mrb[4].mxu0 %v558_v14  ;;  %528 = vmatmul.mubr.bf16.gmra.mrb[4].mxu1 %v562_v15 }
  0xf5   :  { %v517_v16 = vpop.f32.mrb[0].mxu0  ;;  %v525_v17 = vpop.f32.mrb[0].mxu1 }
  0xf6   :  { %v176_v18 = vpop.f32.mrb[1].mxu0  ;;  %v208_v19 = vpop.f32.mrb[1].mxu1  ;;  %v342_v31 = vmul.f32 %v517_v16, %v517_v16  ;;  %v350_v3 = vmul.f32 %v525_v17, %v525_v17 }
  0xf7   :  { %v518_v20 = vpop.f32.mrb[2].mxu0  ;;  %v526_v21 = vpop.f32.mrb[2].mxu1  ;;  %v340_v22 = vmul.f32 %v176_v18, %v176_v18  ;;  %v348_v61 = vmul.f32 %v208_v19, %v208_v19 }
  0xf8   :  { %v444_v23 = vpack.c.bf16 %v518_v20, %v517_v16  ;;  %v179_v24 = vpop.f32.mrb[3].mxu0  ;;  %v464_v25 = vpack.c.bf16 %v526_v21, %v525_v17  ;;  %v211_v26 = vpop.f32.mrb[3].mxu1  ;;  %v343_v34 = vmul.f32 %v518_v20, %v518_v20  ;;  %v351_v6 = vmul.f32 %v526_v21, %v526_v21 }
  0xf9   :  { %v439_v27 = vpack.c.bf16 %v179_v24, %v176_v18  ;;  %v319_v28 = vadd.f32 %v179_v24, %v176_v18  ;;  %v341_v29 = vmul.f32 %v179_v24, %v179_v24  ;;  %v459_v30 = vpack.c.bf16 %v211_v26, %v208_v19 }
  0xfa   :  { %476 = vst [vmem:[%s660_s2 + $0x8] sm:$0xff] %v444_v23   ;;  %480 = vst [vmem:[%s660_s2 + $0x28] sm:$0xff] %v464_v25   ;;  %v349_v2 = vmul.f32 %v211_v26, %v211_v26 }
  0xfb   :  { %440 = vst [vmem:[%s660_s2] sm:$0xff] %v439_v27   ;;  %v320_v32 = vadd.f32 %v517_v16, %v319_v28  ;;  %v356_v33 = vadd.f32 %v341_v29, %v340_v22  ;;  %479 = vst [vmem:[%s660_s2 + $0x20] sm:$0xff] %v459_v30  }
  0xfd   :  { %v357_v35 = vadd.f32 %v356_v33, %v342_v31  ;;  %v521_v36 = vpop.f32.mrb[4].mxu0  ;;  %v321_v37 = vadd.f32 %v518_v20, %v320_v32  ;;  %v529_v38 = vpop.f32.mrb[4].mxu1 }
  0xfe   :  { %v192_v39 = vpop.f32.mrb[5].mxu0  ;;  %v224_v40 = vpop.f32.mrb[5].mxu1  ;;  %v346_v55 = vmul.f32 %v521_v36, %v521_v36  ;;  %v354_v15 = vmul.f32 %v529_v38, %v529_v38 }
  0xff   :  { %v322_v41 = vadd.f32 %v321_v37, %v192_v39  ;;  %v344_v42 = vmul.f32 %v192_v39, %v192_v39  ;;  %v358_v43 = vadd.f32 %v357_v35, %v343_v34  ;;  %v522_v44 = vpop.f32.mrb[6].mxu0  ;;  %v530_v45 = vpop.f32.mrb[6].mxu1  ;;  %v352_v9 = vmul.f32 %v224_v40, %v224_v40 }
 0x100   :  { %v454_v46 = vpack.c.bf16 %v522_v44, %v521_v36  ;;  %v195_v47 = vpop.f32.mrb[7].mxu0  ;;  %v474_v48 = vpack.c.bf16 %v530_v45, %v529_v38  ;;  %v227_v49 = vpop.f32.mrb[7].mxu1  ;;  %v347_v58 = vmul.f32 %v522_v44, %v522_v44 }
 0x101   :  { %v359_v50 = vadd.f32 %v358_v43, %v344_v42  ;;  %v449_v51 = vpack.c.bf16 %v195_v47, %v192_v39  ;;  %v323_v52 = vadd.f32 %v322_v41, %v195_v47  ;;  %v345_v53 = vmul.f32 %v195_v47, %v195_v47 }
 0x102   :  { %478 = vst [vmem:[%s660_s2 + $0x18] sm:$0xff] %v454_v46   ;;  %482 = vst [vmem:[%s660_s2 + $0x38] sm:$0xff] %v474_v48   ;;  %v469_v54 = vpack.c.bf16 %v227_v49, %v224_v40  ;;  %v353_v14 = vmul.f32 %v227_v49, %v227_v49 }
 0x103   :  { %477 = vst [vmem:[%s660_s2 + $0x10] sm:$0xff] %v449_v51   ;;  %v324_v56 = vadd.f32 %v521_v36, %v323_v52  ;;  %v360_v57 = vadd.f32 %v359_v50, %v345_v53 }
 0x104   :  { %481 = vst [vmem:[%s660_s2 + $0x30] sm:$0xff] %v469_v54  }
 0x105   :  { %v361_v59 = vadd.f32 %v360_v57, %v346_v55  ;;  %v325_v60 = vadd.f32 %v522_v44, %v324_v56 }
 0x107   :  { %v326_v62 = vadd.f32 %v325_v60, %v208_v19  ;;  %v362_v63 = vadd.f32 %v361_v59, %v347_v58  ;;  %v355_v19 = vmul.f32 %v530_v45, %v530_v45 }
 0x109   :  { %v363_v0 = vadd.f32 %v362_v63, %v348_v61  ;;  %v327_v1 = vadd.f32 %v326_v62, %v211_v26 }
 0x10b   :  { %v328_v4 = vadd.f32 %v525_v17, %v327_v1  ;;  %v364_v5 = vadd.f32 %v363_v0, %v349_v2 }
 0x10d   :  { %v365_v7 = vadd.f32 %v364_v5, %v350_v3  ;;  %v329_v8 = vadd.f32 %v526_v21, %v328_v4 }
 0x10f   :  { %v330_v10 = vadd.f32 %v329_v8, %v224_v40  ;;  %v366_v11 = vadd.f32 %v365_v7, %v351_v6 }
 0x111   :  { %v367_v12 = vadd.f32 %v366_v11, %v352_v9  ;;  %v331_v13 = vadd.f32 %v330_v10, %v227_v49 }
 0x113   :  { %v332_v16 = vadd.f32 %v529_v38, %v331_v13  ;;  %v368_v18 = vadd.f32 %v367_v12, %v353_v14 }
 0x115   :  { %v333_v20 = vadd.f32 %v530_v45, %v332_v16  ;;  %v369_v22 = vadd.f32 %v368_v18, %v354_v15 }
 0x117   :  { %v334_v23 = vrot.slane %v333_v20, 4  ;;  %v370_v24 = vadd.f32 %v369_v22, %v355_v19 }
 0x119   :  { %v335_v25 = vadd.f32 %v334_v23, %v333_v20  ;;  %v371_v17 = vrot.slane %v370_v24, 4 }
 0x11b   :  { %v336_v26 = vrot.slane %v335_v25, 2  ;;  %v372_v27 = vadd.f32 %v371_v17, %v370_v24 }
 0x11d   :  { %v337_v28 = vadd.f32 %v336_v26, %v335_v25  ;;  %v373_v21 = vrot.slane %v372_v27, 2 }
 0x11f   :  { %v338_v29 = vrot.slane %v337_v28, 1  ;;  %v374_v30 = vadd.f32 %v373_v21, %v372_v27 }
 0x121   :  { %v375_v31 = vrot.slane %v374_v30, 1  ;;  %v339_v32 = vadd.f32 %v338_v29, %v337_v28 }
 0x123   :  { %v376_v33 = vadd.f32 %v375_v31, %v374_v30 }
 0x125   :  { %v378_v34 = vsel %vm377_vm0, %v339_v32, %v376_v33 }
 0x126   :  { %379 = vst [vmem:[%s661_s3] sm:$0x3] %v378_v34 }

// kernel: basic_block_forward.9
= control target key start
LH: loop header
LB: loop body
LE: loop exit
PB: predicated region body
PF: predicated region fallthrough
CT: control target
= control target key end

     0   :  { %s528_s0 = inlined_call_operand.vmem [shape: bf16[128,128], index: 0, kind: input, shape index: {}]   ;;  %s529_s1 = inlined_call_operand.vmem [shape: f32[1,128], index: 1, kind: input, shape index: {}]   ;;  %s530_s2 = inlined_call_operand.vmem [shape: f32[1,128], index: 2, kind: input, shape index: {}]   ;;  %s531_s3 = inlined_call_operand.vmem [shape: bf16[128,128], index: 3, kind: input, shape index: {}]   ;;  %s532_s4 = inlined_call_operand.vmem [shape: f32[1,128], index: 4, kind: input, shape index: {}]   ;;  %s533_s5 = inlined_call_operand.vmem [shape: f32[1,128], index: 5, kind: input, shape index: {}]   ;;  %s534_s6 = inlined_call_operand.vmem [shape: f32[128,128], index: 6, kind: output, shape index: {}]  }
   0x1   :  { %v236_v0 = vld [vmem:[%s528_s0] sm:$0xff]   ;;  %v299_v9 = vld [vmem:[%s528_s0 + $0x8] sm:$0xff]   ;;  %v300_v20 = vld [vmem:[%s528_s0 + $0x10] sm:$0xff]  }
   0x2   :  { %v354_v1 = vld [vmem:[%s529_s1] ss:$0 sm:$0xff]  ;;  %v237_v2 = vunpack.c.l.bf16 %v236_v0  ;;  %v238_v5 = vunpack.c.h.bf16 %v236_v0  ;;  %v306_v10 = vld [vmem:[%s531_s3 + $0x8] sm:$0xff]   ;;  %v241_v14 = vunpack.c.l.bf16 %v299_v9  ;;  %v242_v18 = vunpack.c.h.bf16 %v299_v9  ;;  %v307_v21 = vld [vmem:[%s531_s3 + $0x10] sm:$0xff]  }
   0x3   :  { %v268_v3 = vld [vmem:[%s531_s3] sm:$0xff]   ;;  %v273_v15 = vunpack.c.l.bf16 %v306_v10  ;;  %v274_v19 = vunpack.c.h.bf16 %v306_v10  ;;  %v245_v32 = vunpack.c.l.bf16 %v300_v20  ;;  %v277_v33 = vunpack.c.l.bf16 %v307_v21  ;;  %v301_v42 = vld [vmem:[%s528_s0 + $0x18] sm:$0xff]  }
   0x4   :  { %v362_v4 = vld [vmem:[%s532_s4] ss:$0 sm:$0xff]  ;;  %v269_v7 = vunpack.c.l.bf16 %v268_v3  ;;  %v270_v8 = vunpack.c.h.bf16 %v268_v3  ;;  %v62_v11 = vmul.f32 %v237_v2, %v354_v1  ;;  %v63_v13 = vmul.f32 %v238_v5, %v354_v1  ;;  %v308_v43 = vld [vmem:[%s531_s3 + $0x18] sm:$0xff]  }
   0x5   :  { %v367_v6 = vld [vmem:[%s530_s2] ss:$0 sm:$0xff]  ;;  %v64_v24 = vmul.f32 %v241_v14, %v354_v1  ;;  %v142_v25 = vmul.f32 %v273_v15, %v362_v4  ;;  %v65_v28 = vmul.f32 %v242_v18, %v354_v1  ;;  %v143_v29 = vmul.f32 %v274_v19, %v362_v4  ;;  %v303_v14 = vld [vmem:[%s528_s0 + $0x28] sm:$0xff]  }
   0x6   :  { %v379_v12 = vld [vmem:[%s533_s5] ss:$0 sm:$0xff]  ;;  %v140_v16 = vmul.f32 %v269_v7, %v362_v4  ;;  %v141_v17 = vmul.f32 %v270_v8, %v362_v4  ;;  %v85_v22 = vadd.f32 %v367_v6, %v62_v11  ;;  %v86_v23 = vadd.f32 %v367_v6, %v63_v13  ;;  %v310_v19 = vld [vmem:[%s531_s3 + $0x28] sm:$0xff]  }
   0x7   :  { %v87_v30 = vadd.f32 %v367_v6, %v64_v24  ;;  %v165_v31 = vadd.f32 %v379_v12, %v142_v25  ;;  %v88_v36 = vadd.f32 %v367_v6, %v65_v28  ;;  %v166_v37 = vadd.f32 %v379_v12, %v143_v29  ;;  %v302_v52 = vld [vmem:[%s528_s0 + $0x20] sm:$0xff]  }
   0x8   :  { %v163_v26 = vadd.f32 %v379_v12, %v140_v16  ;;  %v164_v27 = vadd.f32 %v379_v12, %v141_v17  ;;  %v66_v39 = vmul.f32 %v245_v32, %v354_v1  ;;  %v144_v40 = vmul.f32 %v277_v33, %v362_v4  ;;  %v309_v57 = vld [vmem:[%s531_s3 + $0x20] sm:$0xff]   ;;  %v304_v32 = vld [vmem:[%s528_s0 + $0x30] sm:$0xff]  }
   0x9   :  { %v181_v38 = vadd.f32 %v165_v31, %v87_v30  ;;  %v246_v41 = vunpack.c.h.bf16 %v300_v20  ;;  %v182_v46 = vadd.f32 %v166_v37, %v88_v36  ;;  %v278_v47 = vunpack.c.h.bf16 %v307_v21  ;;  %v311_v33 = vld [vmem:[%s531_s3 + $0x30] sm:$0xff]  }
   0xa   :  { %v179_v34 = vadd.f32 %v163_v26, %v85_v22  ;;  %v180_v35 = vadd.f32 %v164_v27, %v86_v23  ;;  %v89_v49 = vadd.f32 %v367_v6, %v66_v39  ;;  %v167_v50 = vadd.f32 %v379_v12, %v144_v40 }
   0xb   :  { %v197_v48 = vmax.f32 %v181_v38, 0.0  ;;  %v67_v51 = vmul.f32 %v246_v41, %v354_v1  ;;  %v198_v53 = vmax.f32 %v182_v46, 0.0  ;;  %v145_v54 = vmul.f32 %v278_v47, %v362_v4  ;;  %v305_v46 = vld [vmem:[%s528_s0 + $0x38] sm:$0xff]  }
   0xc   :  { %v195_v44 = vmax.f32 %v179_v34, 0.0  ;;  %v196_v45 = vmax.f32 %v180_v35, 0.0  ;;  %v249_v55 = vunpack.c.l.bf16 %v301_v42  ;;  %v281_v56 = vunpack.c.l.bf16 %v308_v43 }
   0xd   :  { %213 = vst [vmem:[%s534_s6 + $0x10] sm:$0xff] %v197_v48  ;;  %v183_v58 = vadd.f32 %v167_v50, %v89_v49  ;;  %v90_v59 = vadd.f32 %v367_v6, %v67_v51  ;;  %v250_v60 = vunpack.c.h.bf16 %v301_v42  ;;  %v282_v61 = vunpack.c.h.bf16 %v308_v43  ;;  %214 = vst [vmem:[%s534_s6 + $0x18] sm:$0xff] %v198_v53 }
   0xe   :  { %211 = vst [vmem:[%s534_s6] sm:$0xff] %v195_v44  ;;  %212 = vst [vmem:[%s534_s6 + $0x8] sm:$0xff] %v196_v45  ;;  %v168_v62 = vadd.f32 %v379_v12, %v145_v54  ;;  %v68_v63 = vmul.f32 %v249_v55, %v354_v1  ;;  %v146_v0 = vmul.f32 %v281_v56, %v362_v4  ;;  %v253_v2 = vunpack.c.l.bf16 %v302_v52  ;;  %v312_v55 = vld [vmem:[%s531_s3 + $0x38] sm:$0xff]  }
   0xf   :  { %v199_v3 = vmax.f32 %v183_v58, 0.0  ;;  %v69_v5 = vmul.f32 %v250_v60, %v354_v1  ;;  %v147_v7 = vmul.f32 %v282_v61, %v362_v4  ;;  %v285_v8 = vunpack.c.l.bf16 %v309_v57 }
  0x10   :  { %v184_v9 = vadd.f32 %v168_v62, %v90_v59  ;;  %v91_v10 = vadd.f32 %v367_v6, %v68_v63  ;;  %v169_v11 = vadd.f32 %v379_v12, %v146_v0  ;;  %v70_v13 = vmul.f32 %v253_v2, %v354_v1 }
  0x11   :  { %215 = vst [vmem:[%s534_s6 + $0x20] sm:$0xff] %v199_v3  ;;  %v92_v15 = vadd.f32 %v367_v6, %v69_v5  ;;  %v170_v16 = vadd.f32 %v379_v12, %v147_v7  ;;  %v148_v17 = vmul.f32 %v285_v8, %v362_v4  ;;  %v254_v18 = vunpack.c.h.bf16 %v302_v52 }
  0x12   :  { %v200_v20 = vmax.f32 %v184_v9, 0.0  ;;  %v185_v21 = vadd.f32 %v169_v11, %v91_v10  ;;  %v93_v22 = vadd.f32 %v367_v6, %v70_v13  ;;  %v286_v23 = vunpack.c.h.bf16 %v309_v57 }
  0x13   :  { %v186_v24 = vadd.f32 %v170_v16, %v92_v15  ;;  %v171_v25 = vadd.f32 %v379_v12, %v148_v17  ;;  %v71_v26 = vmul.f32 %v254_v18, %v354_v1  ;;  %v257_v27 = vunpack.c.l.bf16 %v303_v14 }
  0x14   :  { %216 = vst [vmem:[%s534_s6 + $0x28] sm:$0xff] %v200_v20  ;;  %v201_v28 = vmax.f32 %v185_v21, 0.0  ;;  %v149_v29 = vmul.f32 %v286_v23, %v362_v4  ;;  %v289_v30 = vunpack.c.l.bf16 %v310_v19  ;;  %v258_v31 = vunpack.c.h.bf16 %v303_v14 }
  0x15   :  { %v202_v34 = vmax.f32 %v186_v24, 0.0  ;;  %v187_v35 = vadd.f32 %v171_v25, %v93_v22  ;;  %v94_v36 = vadd.f32 %v367_v6, %v71_v26  ;;  %v72_v37 = vmul.f32 %v257_v27, %v354_v1 }
  0x16   :  { %217 = vst [vmem:[%s534_s6 + $0x30] sm:$0xff] %v201_v28  ;;  %v172_v38 = vadd.f32 %v379_v12, %v149_v29  ;;  %v150_v39 = vmul.f32 %v289_v30, %v362_v4  ;;  %v73_v40 = vmul.f32 %v258_v31, %v354_v1  ;;  %v290_v41 = vunpack.c.h.bf16 %v310_v19 }
  0x17   :  { %218 = vst [vmem:[%s534_s6 + $0x38] sm:$0xff] %v202_v34  ;;  %v203_v42 = vmax.f32 %v187_v35, 0.0  ;;  %v95_v43 = vadd.f32 %v367_v6, %v72_v37  ;;  %v261_v44 = vunpack.c.l.bf16 %v304_v32  ;;  %v293_v45 = vunpack.c.l.bf16 %v311_v33 }
  0x18   :  { %v188_v47 = vadd.f32 %v172_v38, %v94_v36  ;;  %v173_v48 = vadd.f32 %v379_v12, %v150_v39  ;;  %v96_v49 = vadd.f32 %v367_v6, %v73_v40  ;;  %v151_v50 = vmul.f32 %v290_v41, %v362_v4 }
  0x19   :  { %219 = vst [vmem:[%s534_s6 + $0x40] sm:$0xff] %v203_v42  ;;  %v74_v51 = vmul.f32 %v261_v44, %v354_v1  ;;  %v152_v52 = vmul.f32 %v293_v45, %v362_v4  ;;  %v262_v53 = vunpack.c.h.bf16 %v304_v32  ;;  %v294_v54 = vunpack.c.h.bf16 %v311_v33 }
  0x1a   :  { %v204_v56 = vmax.f32 %v188_v47, 0.0  ;;  %v189_v57 = vadd.f32 %v173_v48, %v95_v43  ;;  %v174_v58 = vadd.f32 %v379_v12, %v151_v50  ;;  %v265_v59 = vunpack.c.l.bf16 %v305_v46 }
  0x1b   :  { %v97_v60 = vadd.f32 %v367_v6, %v74_v51  ;;  %v175_v61 = vadd.f32 %v379_v12, %v152_v52  ;;  %v75_v62 = vmul.f32 %v262_v53, %v354_v1  ;;  %v153_v63 = vmul.f32 %v294_v54, %v362_v4 }
  0x1c   :  { %220 = vst [vmem:[%s534_s6 + $0x48] sm:$0xff] %v204_v56  ;;  %v205_v0 = vmax.f32 %v189_v57, 0.0  ;;  %v190_v2 = vadd.f32 %v174_v58, %v96_v49  ;;  %v76_v3 = vmul.f32 %v265_v59, %v354_v1  ;;  %v297_v5 = vunpack.c.l.bf16 %v312_v55 }
  0x1d   :  { %v191_v7 = vadd.f32 %v175_v61, %v97_v60  ;;  %v98_v8 = vadd.f32 %v367_v6, %v75_v62  ;;  %v176_v9 = vadd.f32 %v379_v12, %v153_v63  ;;  %v266_v10 = vunpack.c.h.bf16 %v305_v46 }
  0x1e   :  { %221 = vst [vmem:[%s534_s6 + $0x50] sm:$0xff] %v205_v0  ;;  %v206_v11 = vmax.f32 %v190_v2, 0.0  ;;  %v99_v13 = vadd.f32 %v367_v6, %v76_v3  ;;  %v154_v14 = vmul.f32 %v297_v5, %v362_v4  ;;  %v298_v15 = vunpack.c.h.bf16 %v312_v55 }
  0x1f   :  { %v207_v16 = vmax.f32 %v191_v7, 0.0  ;;  %v192_v17 = vadd.f32 %v176_v9, %v98_v8  ;;  %v77_v18 = vmul.f32 %v266_v10, %v354_v1 }
  0x20   :  { %222 = vst [vmem:[%s534_s6 + $0x58] sm:$0xff] %v206_v11  ;;  %v177_v19 = vadd.f32 %v379_v12, %v154_v14  ;;  %v155_v20 = vmul.f32 %v298_v15, %v362_v4 }
  0x21   :  { %223 = vst [vmem:[%s534_s6 + $0x60] sm:$0xff] %v207_v16  ;;  %v208_v21 = vmax.f32 %v192_v17, 0.0  ;;  %v100_v22 = vadd.f32 %v367_v6, %v77_v18 }
  0x22   :  { %v193_v23 = vadd.f32 %v177_v19, %v99_v13  ;;  %v178_v24 = vadd.f32 %v379_v12, %v155_v20 }
  0x23   :  { %224 = vst [vmem:[%s534_s6 + $0x68] sm:$0xff] %v208_v21 }
  0x24   :  { %v209_v1 = vmax.f32 %v193_v23, 0.0  ;;  %v194_v25 = vadd.f32 %v178_v24, %v100_v22 }
  0x26   :  { %225 = vst [vmem:[%s534_s6 + $0x70] sm:$0xff] %v209_v1  ;;  %v210_v4 = vmax.f32 %v194_v25, 0.0 }
  0x28   :  { %226 = vst [vmem:[%s534_s6 + $0x78] sm:$0xff] %v210_v4 }

</bundles_post_ra>
